<compile_context>
chip_gen: v5e
topology: v5e:2x2
jax: 0.10.0
libtpu: 0.0.40
codegen_flags: <defaults>
</compile_context>

<pallas_src>
import numpy as np
import jax
import jax.numpy as jnp
from jax.experimental import pallas as pl
from jax.experimental.pallas import tpu as pltpu

NUM_BASELINES = 3
MEAN = True
SCALE = float(NUM_BASELINES) if MEAN else 1.0  # len(baselines) if mean else 1

_PART_ROWS, _PART_LANES = 8, 128               # per-row-block partial tile
_LOG_PART_ELEMS = float(np.log(_PART_ROWS * _PART_LANES))


# --------------------------------------------------------------------------
# Tiling / VMEM budgeting helpers
# --------------------------------------------------------------------------
def _round_up(x: int, m: int) -> int:
    return (x + m - 1) // m * m


def _tile_cands(n: int, base: int):
    """Full extent plus power-of-two multiples of `base` that divide n (desc)."""
    cands = {n}
    d = base
    while d < n:
        if n % d == 0:
            cands.add(d)
        d *= 2
    return sorted(cands, reverse=True)


def _vmem_budget():
    """(scoped vmem limit, neg-tile byte budget) keyed off physical VMEM."""
    try:
        phys = int(pltpu.get_tpu_info().vmem_capacity_bytes)
    except Exception:
        phys = 64 << 20                          # conservative (v7x per-core VMEM)
    # ~60% of physical: ~76 MiB on 128 MiB chips (v5e/v6e), ~38 MiB on v7x.
    limit = max(32 << 20, min(int(phys * 0.6), 96 << 20))
    return limit, limit - (4 << 20)


def _pick_neg_tiles(bp_r: int, bp_c: int, tile_budget: int):
    """Row/column tile for the streamed (bp_r, bp_c) logsumexp.

    Constraint: 2 double-buffered tiles + 1 tile of compute headroom fit the
    budget.  Prefer the widest column tile (HBM/DMA contiguity), then a row
    split of >= 2 blocks (megacore on v7x), then the biggest tile.
    """
    best = None
    for tm in _tile_cands(bp_r, 8):
        for tk in _tile_cands(bp_c, 128):
            if 3 * tm * tk * 4 > tile_budget:
                continue
            score = (tk, int(bp_r // tm >= 2), tm * tk)
            if best is None or score > best[0]:
                best = (score, tm, tk)
    if best is None:                             # budget smaller than min tile
        return min(_tile_cands(bp_r, 8)), min(_tile_cands(bp_c, 128))
    return best[1], best[2]


def _pick_epilogue_rows(B: int, H: int) -> int:
    if B % 8 != 0:
        return B                                 # full-extent block is always legal
    for tm in _tile_cands(B, 8):                 # descending
        if 2 * tm * (H + 128) * 4 <= (12 << 20):
            return tm
    return 8


# --------------------------------------------------------------------------
# Phase A: streamed online logsumexp over neg_similarity
# --------------------------------------------------------------------------
def _lse_kernel(neg_ref, part_ref, m_ref, s_ref):
    """Online logsumexp over the column (reduction) axis for one row block."""
    k = pl.program_id(1)
    nk = pl.num_programs(1)

    @pl.when(k == 0)
    def _init():
        m_ref[...] = jnp.full_like(m_ref, -jnp.inf)
        s_ref[...] = jnp.zeros_like(s_ref)

    tile = neg_ref[...].astype(jnp.float32)                 # (TM, TK)
    m_prev = m_ref[...]                                     # (1, 1)
    m_new = jnp.maximum(m_prev, jnp.max(tile, keepdims=True))
    # Guard the all--inf case (exp(-inf - -inf) would be NaN).
    m_exp = jnp.where(m_new == -jnp.inf, jnp.zeros_like(m_new), m_new)
    # Fused exp + sum: no materialized (TM, TK) temporary.
    s_ref[...] = (s_ref[...] * jnp.exp(m_prev - m_exp)
                  + jnp.sum(jnp.exp(tile - m_exp), keepdims=True))
    m_ref[...] = m_new

    @pl.when(k == nk - 1)
    def _finalize():
        lse = m_ref[...] + jnp.log(s_ref[...])              # (1, 1)
        part_ref[...] = jnp.broadcast_to(lse, part_ref.shape)


# --------------------------------------------------------------------------
# Phase B: combine partials + Linear(H->1) + constant, divide by scale
# --------------------------------------------------------------------------
def _make_epilogue_kernel(log_norm: float, inv_scale: float):
    log_norm = float(log_norm)                  # log(B*B) + log(8*128)
    inv_scale = float(inv_scale)

    def kernel(part_ref, ctx_ref, w_ref, scalars_ref, out_ref):
        # Each row-block partial lse is broadcast over an (8,128) tile, hence
        # the log(8*128) correction folded into log_norm.
        part = part_ref[...]                                # (n_rb*8, 128)
        pmax = jnp.max(part, keepdims=True)                 # (1, 1)
        pmax_safe = jnp.where(pmax == -jnp.inf, jnp.zeros_like(pmax), pmax)
        glse = pmax + jnp.log(jnp.sum(jnp.exp(part - pmax_safe), keepdims=True))
        lme = glse - log_norm                               # logmeanexp(neg), (1,1)

        # EmbeddingBaseline Linear(H -> 1): VPU multiply + XLU row reduce.
        ctx = ctx_ref[...].astype(jnp.float32)              # (TMe, H)
        lin = jnp.sum(ctx * w_ref[...], axis=-1, keepdims=True) + scalars_ref[0]

        const = scalars_ref[1]                              # ConstantBaseline
        out_ref[...] = ((const + lme + lin) * inv_scale).astype(out_ref.dtype)

    return kernel


# --------------------------------------------------------------------------
# Wrapper
# --------------------------------------------------------------------------
def additive_baseline(neg_similarity, context_embedding, w, b, const):
    """neg_similarity: (B, B), context_embedding: (B, H), w: (H, 1),
    b: () f32, const: () f32  ->  (B, 1) f32"""
    B, H = context_embedding.shape
    assert neg_similarity.shape == (B, B)

    # --- Phase A inputs: pad to TPU-friendly extents (-inf => exp() adds 0) ---
    bp_r, bp_c = _round_up(B, 8), _round_up(B, 128)
    if (bp_r, bp_c) != (B, B):
        neg_p = jnp.pad(neg_similarity, ((0, bp_r - B), (0, bp_c - B)),
                        constant_values=-jnp.inf)
    else:
        neg_p = neg_similarity

    vmem_limit, tile_budget = _vmem_budget()
    tm, tk = _pick_neg_tiles(bp_r, bp_c, tile_budget)
    n_rb, n_cb = bp_r // tm, bp_c // tk

    partials = pl.pallas_call(
        _lse_kernel,
        out_shape=jax.ShapeDtypeStruct((n_rb * _PART_ROWS, _PART_LANES), jnp.float32),
        grid_spec=pltpu.PrefetchScalarGridSpec(
            num_scalar_prefetch=0,
            grid=(n_rb, n_cb),                       # rows parallel, cols reduce
            in_specs=[pl.BlockSpec((tm, tk), lambda i, k: (i, k))],
            out_specs=pl.BlockSpec((_PART_ROWS, _PART_LANES), lambda i, k: (i, 0)),
            scratch_shapes=[pltpu.VMEM((1, 1), jnp.float32),   # running max
                            pltpu.VMEM((1, 1), jnp.float32)],  # running sum
        ),
        compiler_params=pltpu.CompilerParams(
            dimension_semantics=("parallel", "arbitrary"),
            vmem_limit_bytes=vmem_limit,
        ),
        cost_estimate=pl.CostEstimate(
            flops=3 * bp_r * bp_c,
            transcendentals=bp_r * bp_c,
            bytes_accessed=int(np.dtype(neg_p.dtype).itemsize) * bp_r * bp_c
                           + 4 * n_rb * _PART_ROWS * _PART_LANES,
        ),
    )(neg_p)

    # --- Phase B: tiny epilogue ----------------------------------------------
    w_row = jnp.asarray(w, jnp.float32).reshape(1, H)        # lane-major weights
    scalars = jnp.stack([jnp.asarray(b, jnp.float32).reshape(()),
                         jnp.asarray(const, jnp.float32).reshape(())])  # (2,) SMEM

    tm_e = _pick_epilogue_rows(B, H)
    log_norm = float(np.log(float(B) * float(B)) + _LOG_PART_ELEMS)

    return pl.pallas_call(
        _make_epilogue_kernel(log_norm, 1.0 / SCALE),
        out_shape=jax.ShapeDtypeStruct((B, 1), jnp.float32),
        grid_spec=pltpu.PrefetchScalarGridSpec(
            num_scalar_prefetch=0,
            grid=(B // tm_e,),
            in_specs=[
                pl.BlockSpec((n_rb * _PART_ROWS, _PART_LANES), lambda i: (0, 0)),
                pl.BlockSpec((tm_e, H), lambda i: (i, 0)),            # ctx row tile
                pl.BlockSpec((1, H), lambda i: (0, 0)),               # weight row
                pl.BlockSpec(memory_space=pltpu.MemorySpace.SMEM),    # [bias, const]
            ],
            out_specs=pl.BlockSpec((tm_e, 1), lambda i: (i, 0)),
        ),
        compiler_params=pltpu.CompilerParams(
            dimension_semantics=("parallel",),
        ),
        cost_estimate=pl.CostEstimate(
            flops=2 * B * H + 8 * B,
            transcendentals=n_rb * _PART_ROWS * _PART_LANES,
            bytes_accessed=4 * (B * H + B + H + 2
                                + n_rb * _PART_ROWS * _PART_LANES),
        ),
    )(partials, context_embedding, w_row, scalars)


def reference(neg_similarity, context_embedding, w, b, const):
    lme = jax.nn.logsumexp(neg_similarity) - jnp.log(neg_similarity.size)
    lin = context_embedding @ w + b
    return (const + lme + lin) / SCALE


if __name__ == "__main__":
    B, H = 8, 32
    key = jax.random.PRNGKey(0)
    k_neg, k_ctx, k_w, k_b, k_c = jax.random.split(key, 5)

    # Deterministic synthetic inputs / parameters.
    neg_similarity = jax.random.normal(k_neg, (B, B), jnp.float32)
    context_embedding = jax.random.normal(k_ctx, (B, H), jnp.float32)

    # EmbeddingBaseline Linear(H, 1): PyTorch-default-style uniform init.
    bound = 1.0 / np.sqrt(H)
    w = jax.random.uniform(k_w, (H, 1), jnp.float32, -bound, bound)
    b = jax.random.uniform(k_b, (), jnp.float32, -bound, bound)
    # ConstantBaseline parameter.
    const = jax.random.normal(k_c, (), jnp.float32) * 0.1

    out = additive_baseline(neg_similarity, context_embedding, w, b, const)
    out = jax.block_until_ready(out)

    ref = reference(neg_similarity, context_embedding, w, b, const)
    np.testing.assert_allclose(np.asarray(out), np.asarray(ref), rtol=1e-5, atol=1e-5)
    assert out.shape == (B, 1)
    print("KERNEL_OK")
</pallas_src>

<mosaic_0001>
module attributes {stable_mosaic.version = 11 : i64} {
  func.func @_lse_kernel(%arg0: i32, %arg1: i32, %arg2: memref<8x128xf32, #tpu.memory_space<vmem>>, %arg3: memref<8x128xf32, #tpu.memory_space<vmem>>, %arg4: memref<1x1xf32, #tpu.memory_space<vmem>>, %arg5: memref<1x1xf32, #tpu.memory_space<vmem>>) attributes {dimension_semantics = [#tpu.dimension_semantics<parallel>, #tpu.dimension_semantics<arbitrary>], iteration_bounds = array<i64: 1, 1>, scalar_prefetch = 0 : i64, scratch_operands = 2 : i64, tpu.core_type = #tpu.core_type<tc>, window_params = [{transform_indices = @transform_0, window_bounds = array<i64: 8, 128>}, {transform_indices = @transform_1, window_bounds = array<i64: 8, 128>}]} {
    %c0_i32 = arith.constant 0 : i32
    %0 = arith.cmpi eq, %arg1, %c0_i32 : i32
    %1 = arith.extui %0 : i1 to i32
    %c0_i32_0 = arith.constant 0 : i32
    %2 = arith.cmpi ne, %1, %c0_i32_0 : i32
    scf.if %2 {
      %cst_15 = arith.constant 0xFF800000 : f32
      %33 = vector.broadcast %cst_15 : f32 to vector<1x1xf32>
      %c0_16 = arith.constant 0 : index
      %c0_17 = arith.constant 0 : index
      %34 = vector.load %arg4[%c0_16, %c0_17] : memref<1x1xf32, #tpu.memory_space<vmem>>, vector<1x1xf32>
      tpu.vector_store %arg4[%c0_16, %c0_17], %33 {strides = array<i32>} : memref<1x1xf32, #tpu.memory_space<vmem>>, vector<1x1xf32>,
      %cst_18 = arith.constant 0.000000e+00 : f32
      %35 = vector.broadcast %cst_18 : f32 to vector<1x1xf32>
      %c0_19 = arith.constant 0 : index
      %c0_20 = arith.constant 0 : index
      %36 = vector.load %arg5[%c0_19, %c0_20] : memref<1x1xf32, #tpu.memory_space<vmem>>, vector<1x1xf32>
      tpu.vector_store %arg5[%c0_19, %c0_20], %35 {strides = array<i32>} : memref<1x1xf32, #tpu.memory_space<vmem>>, vector<1x1xf32>,
    } else {
    }
    %c0 = arith.constant 0 : index
    %c0_1 = arith.constant 0 : index
    %3 = vector.load %arg2[%c0, %c0_1] : memref<8x128xf32, #tpu.memory_space<vmem>>, vector<8x128xf32>
    %c0_2 = arith.constant 0 : index
    %c0_3 = arith.constant 0 : index
    %4 = vector.load %arg4[%c0_2, %c0_3] : memref<1x1xf32, #tpu.memory_space<vmem>>, vector<1x1xf32>
    %5 = vector.shape_cast %3 : vector<8x128xf32> to vector<1x8x128xf32>
    %cst = arith.constant dense<0xFF800000> : vector<1xf32>
    %6 = vector.multi_reduction <maximumf>, %5, %cst [1, 2] : vector<1x8x128xf32> to vector<1xf32>
    %7 = vector.shape_cast %6 : vector<1xf32> to vector<1x1x1xf32>
    %8 = vector.extract %7[0, 0, 0] : f32 from vector<1x1x1xf32>
    %9 = vector.broadcast %8 : f32 to vector<1x1xf32>
    %10 = arith.maximumf %4, %9 : vector<1x1xf32>
    %cst_4 = arith.constant 0xFF800000 : f32
    %11 = vector.broadcast %cst_4 : f32 to vector<1x1xf32>
    %12 = arith.cmpf oeq, %10, %11 : vector<1x1xf32>
    %cst_5 = arith.constant 0.000000e+00 : f32
    %13 = vector.broadcast %cst_5 : f32 to vector<1x1xf32>
    %14 = arith.select %12, %13, %10 : vector<1x1xi1>, vector<1x1xf32>
    %c0_6 = arith.constant 0 : index
    %c0_7 = arith.constant 0 : index
    %15 = vector.load %arg5[%c0_6, %c0_7] : memref<1x1xf32, #tpu.memory_space<vmem>>, vector<1x1xf32>
    %16 = arith.subf %4, %14 : vector<1x1xf32>
    %17 = math.exp %16 : vector<1x1xf32>
    %18 = arith.mulf %15, %17 : vector<1x1xf32>
    %19 = vector.broadcast %14 : vector<1x1xf32> to vector<8x128xf32>
    %20 = arith.subf %3, %19 : vector<8x128xf32>
    %21 = math.exp %20 : vector<8x128xf32>
    %22 = vector.shape_cast %21 : vector<8x128xf32> to vector<1x8x128xf32>
    %cst_8 = arith.constant dense<0.000000e+00> : vector<1xf32>
    %23 = vector.multi_reduction <add>, %22, %cst_8 [1, 2] : vector<1x8x128xf32> to vector<1xf32>
    %24 = vector.shape_cast %23 : vector<1xf32> to vector<1x1x1xf32>
    %25 = vector.extract %24[0, 0, 0] : f32 from vector<1x1x1xf32>
    %26 = vector.broadcast %25 : f32 to vector<1x1xf32>
    %27 = arith.addf %18, %26 : vector<1x1xf32>
    %c0_9 = arith.constant 0 : index
    %c0_10 = arith.constant 0 : index
    %28 = vector.load %arg5[%c0_9, %c0_10] : memref<1x1xf32, #tpu.memory_space<vmem>>, vector<1x1xf32>
    tpu.vector_store %arg5[%c0_9, %c0_10], %27 {strides = array<i32>} : memref<1x1xf32, #tpu.memory_space<vmem>>, vector<1x1xf32>,
    %c0_11 = arith.constant 0 : index
    %c0_12 = arith.constant 0 : index
    %29 = vector.load %arg4[%c0_11, %c0_12] : memref<1x1xf32, #tpu.memory_space<vmem>>, vector<1x1xf32>
    tpu.vector_store %arg4[%c0_11, %c0_12], %10 {strides = array<i32>} : memref<1x1xf32, #tpu.memory_space<vmem>>, vector<1x1xf32>,
    %c0_i32_13 = arith.constant 0 : i32
    %30 = arith.cmpi eq, %arg1, %c0_i32_13 : i32
    %31 = arith.extui %30 : i1 to i32
    %c0_i32_14 = arith.constant 0 : i32
    %32 = arith.cmpi ne, %31, %c0_i32_14 : i32
    scf.if %32 {
      %c0_15 = arith.constant 0 : index
      %c0_16 = arith.constant 0 : index
      %33 = vector.load %arg4[%c0_15, %c0_16] : memref<1x1xf32, #tpu.memory_space<vmem>>, vector<1x1xf32>
      %c0_17 = arith.constant 0 : index
      %c0_18 = arith.constant 0 : index
      %34 = vector.load %arg5[%c0_17, %c0_18] : memref<1x1xf32, #tpu.memory_space<vmem>>, vector<1x1xf32>
      %35 = math.log %34 : vector<1x1xf32>
      %36 = arith.addf %33, %35 : vector<1x1xf32>
      %37 = vector.shape_cast %36 : vector<1x1xf32> to vector<1x1xf32>
      %38 = vector.broadcast %37 : vector<1x1xf32> to vector<8x128xf32>
      %c0_19 = arith.constant 0 : index
      %c0_20 = arith.constant 0 : index
      %39 = vector.load %arg3[%c0_19, %c0_20] : memref<8x128xf32, #tpu.memory_space<vmem>>, vector<8x128xf32>
      tpu.vector_store %arg3[%c0_19, %c0_20], %38 {strides = array<i32>} : memref<8x128xf32, #tpu.memory_space<vmem>>, vector<8x128xf32>,
    } else {
    }
    return
  }
  func.func @transform_0(%arg0: i32, %arg1: i32) -> (i32, i32) {
    %c0_i32 = arith.constant 0 : i32
    return %arg0, %arg1 : i32, i32
  }
  func.func @transform_1(%arg0: i32, %arg1: i32) -> (i32, i32) {
    %c0_i32 = arith.constant 0 : i32
    %c0_i32_0 = arith.constant 0 : i32
    return %arg0, %c0_i32 : i32, i32
  }
}

</mosaic_0001>

<bundles_post_ra>
// kernel: tpu_custom_call.1
= control target key start
LH: loop header
LB: loop body
LE: loop exit
PB: predicated region body
PF: predicated region fallthrough
CT: control target
= control target key end

     0   :  { %6 = vsyncpa [#allocation5], 0  ;;  %s199_s0 = inlined_call_operand.hbm [shape: f32[8,128], index: 0, kind: input, shape index: {}]   ;;  %s200_s1 = inlined_call_operand.hbm [shape: f32[8,128], index: 1, kind: output, shape index: {}]  }
   0x1   :  { %7 = vsyncpa [#allocation6], 0  ;;  %s13_s8 = sshll.u32 %s199_s0, 4  ;;  %s174_s9 = smov [#allocation4]   ;;  %s14_s8 = int_to_ptr.hbm [resolvable:$true] %s13_s8 }
   0x2   :  { %s15_s10 = sshll.u32 %s174_s9, 4  ;;  %s16_s10 = int_to_ptr.vmem [resolvable:$true] %s15_s10 }
   0x3   :  { %18 = dma.hbm_to_vmem [thread:$0]  %s14_s8, 128, %s16_s10, [#allocation5]  }
   0x4   :  { %170 = dma.done.wait [#allocation5], 128  }
   0x5   :  { %171 = vsyncadd [#allocation5], 4294967168  ;;  %v30_v0 = vld [vmem:[#allocation4] sm:$0xff]  ;;  %vm27_vm0 = vcmask 0   ;;  %v175_v1 = vmov -inf   ;;  %v176_v9 = vmov 0  }
   0x6   :  { %32 = vmax.xlane.f32.xlu0 %v30_v0  ;;  %28 = vst.msk [vmem:[#allocation2] sm:$0x1] %vm27_vm0, %v175_v1  ;;  %115 = vset.pattern.permute.xlu1 %v176_v9  ;;  %v177_v10 = vmov 0.0   ;;  %s178_s12 = smov [#allocation7]   ;;  %s95_s16 = sshll.u32 %s200_s1, 4  ;;  %s96_s16 = int_to_ptr.hbm [resolvable:$true] %s95_s16 }
   0x7   :  { %114 = vset.pattern.permute.xlu0 %v176_v9  ;;  %29 = vst.msk [vmem:[#allocation3] sm:$0x1] %vm27_vm0, %v177_v10  ;;  %s93_s13 = sshll.u32 %s178_s12, 4  ;;  %s94_s13 = int_to_ptr.vmem [resolvable:$true] %s93_s13 }
   0xd   :  { %v31_v11 = vld [vmem:[#allocation2] sm:$0x1] }
   0xe   :  { %v45_v30 = vld [vmem:[#allocation3] sm:$0x1] }
  0x79   :  { %v33_v2 = vpop.xlane.xlu0 %32 }
  0x7a   :  { %v34_v3 = vrot.slane %v33_v2, 4 }
  0x7c   :  { %v35_v4 = vmax.f32 %v33_v2, %v34_v3 }
  0x7e   :  { %v36_v5 = vrot.slane %v35_v4, 2 }
  0x80   :  { %v37_v6 = vmax.f32 %v35_v4, %v36_v5 }
  0x82   :  { %v38_v7 = vrot.slane %v37_v6, 1 }
  0x84   :  { %v39_v8 = vmax.f32 %v37_v6, %v38_v7 }
  0x86   :  { %105 = vpush %v39_v8 }
  0xb7   :  { %s106_s0 = spop %105 }
  0xb8   :  { %v41_v12 = vstv %s106_s0 }
  0xb9   :  { %v42_v13 = vmax.f32 %v31_v11, %v41_v12 }
  0xbb   :  { %72 = vst.msk [vmem:[#allocation2] sm:$0x1] %vm27_vm0, %v42_v13  ;;  %vm43_vm1 = vcmp.eq.f32.partialorder %v42_v13, -inf }
  0xbc   :  { %v44_v14 = vsel %vm43_vm1, 0.0, %v42_v13 }
  0xbd   :  { %v51_v15 = vperm.slane %v44_v14, 0  ;;  %v46_v16 = vsub.f32 %v31_v11, %v44_v14 }
  0xbf   :  { %53 = vperm.xlu0 %114, %v51_v15   ;;  %v47_v28 = vmul.f32 1.442695, %v46_v16 }
  0xc2   :  { %v76_v37 = vld [vmem:[#allocation2] sm:$0x1] }
 0x131   :  { %v54_v17 = vpop.permute.xlu0 %53 }
 0x132   :  { %v56_v18 = vsub.f32 %v30_v0, %v54_v17 }
 0x134   :  { %v57_v19 = vmul.f32 1.442695, %v56_v18 }
 0x136   :  { %116 = vpow2.f32 %v57_v19 }
 0x137   :  { %118 = vpow2.f32 %v47_v28 }
 0x13c   :  { %v117_v20 = vpop.eup %116 }
 0x13d   :  { %59 = vadd.xlane.f32.xlu1 %v117_v20  ;;  %v119_v29 = vpop.eup %118 }
 0x13e   :  { %v49_v31 = vmul.f32 %v119_v29, %v45_v30 }
 0x1b0   :  { %v60_v21 = vpop.xlane.xlu1 %59 }
 0x1b1   :  { %v61_v22 = vrot.slane %v60_v21, 4 }
 0x1b3   :  { %v62_v23 = vadd.f32 %v61_v22, %v60_v21 }
 0x1b5   :  { %v63_v24 = vrot.slane %v62_v23, 2 }
 0x1b7   :  { %v64_v25 = vadd.f32 %v63_v24, %v62_v23 }
 0x1b9   :  { %v65_v26 = vrot.slane %v64_v25, 1 }
 0x1bb   :  { %v66_v27 = vadd.f32 %v65_v26, %v64_v25 }
 0x1bd   :  { %107 = vpush %v66_v27 }
 0x1ee   :  { %s108_s11 = spop %107 }
 0x1ef   :  { %v68_v32 = vstv %s108_s11 }
 0x1f0   :  { %v69_v33 = vadd.f32 %v68_v32, %v49_v31 }
 0x1f2   :  { %71 = vst.msk [vmem:[#allocation3] sm:$0x1] %vm27_vm0, %v69_v33 }
 0x1f9   :  { %v77_v34 = vld [vmem:[#allocation3] sm:$0x1] }
 0x1fa   :  { %120 = vlog2.f32 %v77_v34 }
 0x200   :  { %v121_v35 = vpop.eup %120 }
 0x201   :  { %v79_v36 = vmul.f32 0.6931472, %v121_v35 }
 0x203   :  { %v80_v38 = vadd.f32 %v79_v36, %v76_v37 }
 0x205   :  { %v82_v39 = vperm.slane %v80_v38, 0 }
 0x207   :  { %84 = vperm.xlu1 %115, %v82_v39  }
 0x279   :  { %v85_v40 = vpop.permute.xlu1 %84 }
 0x27a   :  { %87 = vst [vmem:[#allocation7] sm:$0xff] %v85_v40 }
 0x27b   :  { %98 = dma.vmem_to_hbm [thread:$0]  %s94_s13, 128, %s96_s16, [#allocation6]  }
 0x27c   :  { %172 = dma.done.wait [#allocation6], 128  }
 0x27d   :  { %173 = vsyncadd [#allocation6], 4294967168 }
 0x27e   :  { %103 = vsyncpa [#allocation5], 1 }
 0x27f   :  { %104 = vsyncpa [#allocation6], 1 }

</bundles_post_ra>
